<compile_context>
chip_gen: v5e
topology: v5e:2x2
jax: 0.10.0
libtpu: 0.0.40
codegen_flags: <defaults>
</compile_context>

<pallas_src>
import functools

import jax
import jax.numpy as jnp
from jax.experimental import pallas as pl
from jax.experimental.pallas import tpu as pltpu


def _channel_attention_kernel(x_ref, w1_ref, w2_ref, o_ref, sum_ref, max_ref,
                              *, hw, tile_hw):
    # x_ref   : (1, C, tile_hw)  current spatial tile of one batch element
    # w1_ref  : (hid, C)         resident fc1 weight
    # w2_ref  : (C, hid)         resident fc2 weight
    # o_ref   : (1, C, 1)        per-batch output (C on sublanes, matches pooled layout)
    # sum_ref : (C, 1) f32       running spatial sum   (scratch)
    # max_ref : (C, 1) f32       running spatial max   (scratch)
    k = pl.program_id(1)
    n_k = pl.num_programs(1)

    @pl.when(k == 0)
    def _init():
        sum_ref[...] = jnp.zeros_like(sum_ref)
        max_ref[...] = jnp.full_like(max_ref, -jnp.inf)

    x = x_ref[0]  # (C, tile_hw), native dtype

    def _accumulate(x_sum, x_max):
        # Lane-axis reduce: vreg-wise VPU adds/maxes + one small cross-lane
        # reduce per tile; accumulates into f32 scratch.
        sum_ref[...] += jnp.sum(x_sum, axis=-1, keepdims=True, dtype=jnp.float32)
        max_ref[...] = jnp.maximum(
            max_ref[...],
            jnp.max(x_max, axis=-1, keepdims=True).astype(jnp.float32))

    if hw % tile_hw == 0:
        # Even tiling: no masking anywhere.
        _accumulate(x, x)
    else:
        tail_len = hw % tile_hw  # static

        @pl.when(k < n_k - 1)
        def _steady():
            # Fast unmasked path for all non-tail tiles.
            _accumulate(x, x)

        @pl.when(k == n_k - 1)
        def _tail():
            # Only the last (ragged) tile pays for the mask.
            idx = jax.lax.broadcasted_iota(jnp.int32, x.shape, 1)
            in_range = idx < tail_len
            _accumulate(jnp.where(in_range, x, jnp.zeros_like(x)),
                        jnp.where(in_range, x, jnp.full_like(x, -jnp.inf)))

    @pl.when(k == n_k - 1)
    def _finalize():
        avg = sum_ref[...] * (1.0 / hw)                  # (C, 1) f32
        mx = max_ref[...]                                # (C, 1) f32
        pooled = jnp.concatenate([avg, mx], axis=1)      # (C, 2): share one matmul/layer
        w1m = w1_ref[...]                                # (hid, C), native dtype
        w2m = w2_ref[...]                                # (C, hid), native dtype
        if w1m.dtype != jnp.float32:
            pooled = pooled.astype(w1m.dtype)
        h = jnp.maximum(
            jnp.dot(w1m, pooled, preferred_element_type=jnp.float32), 0.0)   # (hid, 2)
        if w2m.dtype != jnp.float32:
            h = h.astype(w2m.dtype)
        y = jnp.dot(w2m, h, preferred_element_type=jnp.float32)              # (C, 2)
        gate = jax.nn.sigmoid(y[:, 0:1] + y[:, 1:2])                         # (C, 1)
        o_ref[...] = gate.reshape(1, -1, 1).astype(o_ref.dtype)


def channel_attention(x, w1, w2, *, tile_hw=None, tile_budget_bytes=4 * 1024 * 1024):
    """x: (B, C, H, W); w1: (C//16, C, 1, 1); w2: (C, C//16, 1, 1) -> (B, C, 1, 1)."""
    B, C, H, W = x.shape
    hid = w1.shape[0]
    HW = H * W
    assert jnp.issubdtype(x.dtype, jnp.floating), "float activations required (-inf max mask)"

    # Native-layout views only — no HBM transpose, no weight transposes.
    x_l = x.reshape(B, C, HW)          # free reshape of contiguous NCHW
    w1m = w1.reshape(hid, C)           # (hid, C)
    w2m = w2.reshape(C, hid)           # (C, hid)

    # Spatial (lane-axis) tile: ~tile_budget_bytes per block, multiple of 128
    # lanes unless it covers the whole HW extent.
    if tile_hw is None:
        tile_hw = max(1, tile_budget_bytes // (C * x.dtype.itemsize))
    if tile_hw >= HW or HW <= 128:
        tile_hw = HW
    else:
        tile_hw = max(128, (tile_hw // 128) * 128)

    n_hw = pl.cdiv(HW, tile_hw)

    kernel = functools.partial(_channel_attention_kernel, hw=HW, tile_hw=tile_hw)

    # Explicit VMEM budget: double-buffered x block + resident weights + scratch.
    block_bytes = C * tile_hw * x.dtype.itemsize
    w_bytes = (w1m.size + w2m.size) * w1.dtype.itemsize
    scratch_bytes = 2 * C * 128 * 4          # padded (C, 1) f32 scratch, conservative
    vmem_needed = 2 * block_bytes + 2 * w_bytes + scratch_bytes + (2 << 20)
    vmem_limit = int(min(max(vmem_needed, 8 << 20), 48 << 20))

    cost = pl.CostEstimate(
        flops=2 * B * HW * C + 8 * B * C * hid,
        transcendentals=B * C,
        bytes_accessed=(x.size * x.dtype.itemsize
                        + (w1.size + w2.size) * w1.dtype.itemsize
                        + B * C * x.dtype.itemsize),
    )

    out = pl.pallas_call(
        kernel,
        out_shape=jax.ShapeDtypeStruct((B, C, 1), x.dtype),
        grid_spec=pltpu.PrefetchScalarGridSpec(
            num_scalar_prefetch=0,
            grid=(B, n_hw),
            in_specs=[
                pl.BlockSpec((1, C, tile_hw), lambda b, k: (b, 0, k)),
                pl.BlockSpec((hid, C), lambda b, k: (0, 0)),   # resident weights
                pl.BlockSpec((C, hid), lambda b, k: (0, 0)),
            ],
            out_specs=pl.BlockSpec((1, C, 1), lambda b, k: (b, 0, 0)),
            scratch_shapes=[
                pltpu.VMEM((C, 1), jnp.float32),   # running sum
                pltpu.VMEM((C, 1), jnp.float32),   # running max
            ],
        ),
        compiler_params=pltpu.CompilerParams(
            dimension_semantics=("parallel", "arbitrary"),
            vmem_limit_bytes=vmem_limit),
        cost_estimate=cost,
    )(x_l, w1m, w2m)

    return out.reshape(B, C, 1, 1)


def _reference(x, w1, w2):
    B, C, H, W = x.shape
    hid = w1.shape[0]
    w1m = w1.reshape(hid, C)
    w2m = w2.reshape(C, hid)
    avg = jnp.mean(x, axis=(2, 3))                      # (B, C)
    mx = jnp.max(x, axis=(2, 3))                        # (B, C)
    a = jnp.maximum(avg @ w1m.T, 0.0) @ w2m.T
    m = jnp.maximum(mx @ w1m.T, 0.0) @ w2m.T
    return jax.nn.sigmoid(a + m).reshape(B, C, 1, 1)


if __name__ == "__main__":
    key = jax.random.PRNGKey(0)

    # in_planes must be >= 16 because the module hard-codes // 16.
    B, C, H, W = 2, 32, 16, 16
    hid = C // 16

    kx, k1, k2, key = jax.random.split(key, 4)
    x = jax.random.normal(kx, (B, C, H, W), dtype=jnp.float32)
    w1 = jax.random.normal(k1, (hid, C, 1, 1), dtype=jnp.float32) * (2.0 / C) ** 0.5
    w2 = jax.random.normal(k2, (C, hid, 1, 1), dtype=jnp.float32) * (2.0 / hid) ** 0.5

    ref = _reference(x, w1, w2)

    # Case 1: HW = 256 with 128-wide lane tiles -> 2 pipelined grid steps, even tiling.
    out = channel_attention(x, w1, w2, tile_hw=128)
    jax.block_until_ready(out)
    assert out.shape == (B, C, 1, 1)
    assert jnp.allclose(out, ref, atol=1e-5, rtol=1e-5), "mismatch vs reference (even tiles)"

    # Case 2: default tile budget -> single full-HW tile path.
    out_full = channel_attention(x, w1, w2)
    jax.block_until_ready(out_full)
    assert jnp.allclose(out_full, ref, atol=1e-5, rtol=1e-5), "mismatch vs reference (full tile)"

    # Case 3: ragged tail (HW = 320 with 128-wide tiles -> tail of 64) exercises the
    # pl.when-gated masked reduction on the last tile only.
    kx2, key = jax.random.split(key)
    x2 = jax.random.normal(kx2, (B, C, 20, 16), dtype=jnp.float32)
    out2 = channel_attention(x2, w1, w2, tile_hw=128)
    jax.block_until_ready(out2)
    ref2 = _reference(x2, w1, w2)
    assert jnp.allclose(out2, ref2, atol=1e-5, rtol=1e-5), "mismatch vs reference (ragged tail)"

    print("KERNEL_OK")
</pallas_src>

<mosaic_0001>
module attributes {stable_mosaic.version = 11 : i64} {
  func.func @_channel_attention_kernel(%arg0: i32, %arg1: i32, %arg2: memref<1x32x128xf32, #tpu.memory_space<vmem>>, %arg3: memref<2x32xf32, #tpu.memory_space<vmem>>, %arg4: memref<32x2xf32, #tpu.memory_space<vmem>>, %arg5: memref<1x32x1xf32, #tpu.memory_space<vmem>>, %arg6: memref<32x1xf32, #tpu.memory_space<vmem>>, %arg7: memref<32x1xf32, #tpu.memory_space<vmem>>) attributes {dimension_semantics = [#tpu.dimension_semantics<parallel>, #tpu.dimension_semantics<arbitrary>], iteration_bounds = array<i64: 2, 2>, scalar_prefetch = 0 : i64, scratch_operands = 2 : i64, tpu.core_type = #tpu.core_type<tc>, window_params = [{transform_indices = @transform_0, window_bounds = array<i64: 1, 32, 128>}, {pipeline_mode = #tpu.pipeline_mode<synchronous>, transform_indices = @transform_1, window_bounds = array<i64: 2, 32>}, {pipeline_mode = #tpu.pipeline_mode<synchronous>, transform_indices = @transform_2, window_bounds = array<i64: 32, 2>}, {transform_indices = @transform_3, window_bounds = array<i64: 1, 32, 1>}]} {
    %c0_i32 = arith.constant 0 : i32
    %0 = arith.cmpi eq, %arg1, %c0_i32 : i32
    %1 = arith.extui %0 : i1 to i32
    %c0_i32_0 = arith.constant 0 : i32
    %2 = arith.cmpi ne, %1, %c0_i32_0 : i32
    scf.if %2 {
      %cst_13 = arith.constant 0.000000e+00 : f32
      %18 = vector.broadcast %cst_13 : f32 to vector<32x1xf32>
      %c0_14 = arith.constant 0 : index
      %c0_15 = arith.constant 0 : index
      %19 = vector.load %arg6[%c0_14, %c0_15] : memref<32x1xf32, #tpu.memory_space<vmem>>, vector<32x1xf32>
      tpu.vector_store %arg6[%c0_14, %c0_15], %18 {strides = array<i32>} : memref<32x1xf32, #tpu.memory_space<vmem>>, vector<32x1xf32>,
      %cst_16 = arith.constant 0xFF800000 : f32
      %20 = vector.broadcast %cst_16 : f32 to vector<32x1xf32>
      %c0_17 = arith.constant 0 : index
      %c0_18 = arith.constant 0 : index
      %21 = vector.load %arg7[%c0_17, %c0_18] : memref<32x1xf32, #tpu.memory_space<vmem>>, vector<32x1xf32>
      tpu.vector_store %arg7[%c0_17, %c0_18], %20 {strides = array<i32>} : memref<32x1xf32, #tpu.memory_space<vmem>>, vector<32x1xf32>,
    } else {
    }
    %c0 = arith.constant 0 : index
    %c0_1 = arith.constant 0 : index
    %c0_2 = arith.constant 0 : index
    %3 = vector.load %arg2[%c0, %c0_1, %c0_2] : memref<1x32x128xf32, #tpu.memory_space<vmem>>, vector<1x32x128xf32>
    %4 = vector.shape_cast %3 : vector<1x32x128xf32> to vector<32x128xf32>
    %c0_3 = arith.constant 0 : index
    %c0_4 = arith.constant 0 : index
    %5 = vector.load %arg6[%c0_3, %c0_4] : memref<32x1xf32, #tpu.memory_space<vmem>>, vector<32x1xf32>
    %cst = arith.constant dense<0.000000e+00> : vector<32xf32>
    %6 = vector.multi_reduction <add>, %4, %cst [1] : vector<32x128xf32> to vector<32xf32>
    %7 = vector.shape_cast %6 : vector<32xf32> to vector<32x1xf32>
    %8 = arith.addf %5, %7 : vector<32x1xf32>
    %c0_5 = arith.constant 0 : index
    %c0_6 = arith.constant 0 : index
    %9 = vector.load %arg6[%c0_5, %c0_6] : memref<32x1xf32, #tpu.memory_space<vmem>>, vector<32x1xf32>
    tpu.vector_store %arg6[%c0_5, %c0_6], %8 {strides = array<i32>} : memref<32x1xf32, #tpu.memory_space<vmem>>, vector<32x1xf32>,
    %c0_7 = arith.constant 0 : index
    %c0_8 = arith.constant 0 : index
    %10 = vector.load %arg7[%c0_7, %c0_8] : memref<32x1xf32, #tpu.memory_space<vmem>>, vector<32x1xf32>
    %cst_9 = arith.constant dense<0xFF800000> : vector<32xf32>
    %11 = vector.multi_reduction <maximumf>, %4, %cst_9 [1] : vector<32x128xf32> to vector<32xf32>
    %12 = vector.shape_cast %11 : vector<32xf32> to vector<32x1xf32>
    %13 = arith.maximumf %10, %12 : vector<32x1xf32>
    %c0_10 = arith.constant 0 : index
    %c0_11 = arith.constant 0 : index
    %14 = vector.load %arg7[%c0_10, %c0_11] : memref<32x1xf32, #tpu.memory_space<vmem>>, vector<32x1xf32>
    tpu.vector_store %arg7[%c0_10, %c0_11], %13 {strides = array<i32>} : memref<32x1xf32, #tpu.memory_space<vmem>>, vector<32x1xf32>,
    %c1_i32 = arith.constant 1 : i32
    %15 = arith.cmpi eq, %arg1, %c1_i32 : i32
    %16 = arith.extui %15 : i1 to i32
    %c0_i32_12 = arith.constant 0 : i32
    %17 = arith.cmpi ne, %16, %c0_i32_12 : i32
    scf.if %17 {
      %c0_13 = arith.constant 0 : index
      %c0_14 = arith.constant 0 : index
      %18 = vector.load %arg6[%c0_13, %c0_14] : memref<32x1xf32, #tpu.memory_space<vmem>>, vector<32x1xf32>
      %cst_15 = arith.constant 3.906250e-03 : f32
      %19 = vector.broadcast %cst_15 : f32 to vector<32x1xf32>
      %20 = arith.mulf %18, %19 : vector<32x1xf32>
      %c0_16 = arith.constant 0 : index
      %c0_17 = arith.constant 0 : index
      %21 = vector.load %arg7[%c0_16, %c0_17] : memref<32x1xf32, #tpu.memory_space<vmem>>, vector<32x1xf32>
      %22 = tpu.concatenate %20, %21 in 1 : vector<32x1xf32>, vector<32x1xf32> -> vector<32x2xf32>
      %c0_18 = arith.constant 0 : index
      %c0_19 = arith.constant 0 : index
      %23 = vector.load %arg3[%c0_18, %c0_19] : memref<2x32xf32, #tpu.memory_space<vmem>>, vector<2x32xf32>
      %c0_20 = arith.constant 0 : index
      %c0_21 = arith.constant 0 : index
      %24 = vector.load %arg4[%c0_20, %c0_21] : memref<32x2xf32, #tpu.memory_space<vmem>>, vector<32x2xf32>
      %cst_22 = arith.constant dense<0.000000e+00> : vector<2x2xf32>
      %25 = tpu.matmul %23, %22, %cst_22 {dimension_numbers = #tpu.dot_dimension_numbers<[1], [0], [0], [1], [0, 0, 1, 1], [], []>} : vector<2x32xf32>, vector<32x2xf32>, vector<2x2xf32> -> vector<2x2xf32>
      %cst_23 = arith.constant 0.000000e+00 : f32
      %26 = vector.broadcast %cst_23 : f32 to vector<2x2xf32>
      %27 = arith.maximumf %25, %26 : vector<2x2xf32>
      %cst_24 = arith.constant dense<0.000000e+00> : vector<32x2xf32>
      %28 = tpu.matmul %24, %27, %cst_24 {dimension_numbers = #tpu.dot_dimension_numbers<[1], [0], [0], [1], [0, 0, 1, 1], [], []>} : vector<32x2xf32>, vector<2x2xf32>, vector<32x2xf32> -> vector<32x2xf32>
      %29 = vector.extract_strided_slice %28 {offsets = [0, 0], sizes = [32, 1], strides = [1, 1]} : vector<32x2xf32> to vector<32x1xf32>
      %30 = vector.extract_strided_slice %28 {offsets = [0, 1], sizes = [32, 1], strides = [1, 1]} : vector<32x2xf32> to vector<32x1xf32>
      %31 = arith.addf %29, %30 : vector<32x1xf32>
      %32 = arith.negf %31 : vector<32x1xf32>
      %33 = math.exp %32 : vector<32x1xf32>
      %cst_25 = arith.constant 1.000000e+00 : f32
      %34 = vector.broadcast %cst_25 : f32 to vector<32x1xf32>
      %35 = arith.addf %34, %33 : vector<32x1xf32>
      %36 = arith.divf %34, %35 : vector<32x1xf32>
      %37 = vector.shape_cast %36 : vector<32x1xf32> to vector<1x32x1xf32>
      %c0_26 = arith.constant 0 : index
      %c0_27 = arith.constant 0 : index
      %c0_28 = arith.constant 0 : index
      %38 = vector.load %arg5[%c0_26, %c0_27, %c0_28] : memref<1x32x1xf32, #tpu.memory_space<vmem>>, vector<1x32x1xf32>
      tpu.vector_store %arg5[%c0_26, %c0_27, %c0_28], %37 {strides = array<i32>} : memref<1x32x1xf32, #tpu.memory_space<vmem>>, vector<1x32x1xf32>,
    } else {
    }
    return
  }
  func.func @transform_0(%arg0: i32, %arg1: i32) -> (i32, i32, i32) {
    %c0_i32 = arith.constant 0 : i32
    %c0_i32_0 = arith.constant 0 : i32
    return %arg0, %c0_i32, %arg1 : i32, i32, i32
  }
  func.func @transform_1(%arg0: i32, %arg1: i32) -> (i32, i32) {
    %c0_i32 = arith.constant 0 : i32
    %c0_i32_0 = arith.constant 0 : i32
    %c0_i32_1 = arith.constant 0 : i32
    return %c0_i32, %c0_i32_0 : i32, i32
  }
  func.func @transform_2(%arg0: i32, %arg1: i32) -> (i32, i32) {
    %c0_i32 = arith.constant 0 : i32
    %c0_i32_0 = arith.constant 0 : i32
    %c0_i32_1 = arith.constant 0 : i32
    return %c0_i32, %c0_i32_0 : i32, i32
  }
  func.func @transform_3(%arg0: i32, %arg1: i32) -> (i32, i32, i32) {
    %c0_i32 = arith.constant 0 : i32
    %c0_i32_0 = arith.constant 0 : i32
    %c0_i32_1 = arith.constant 0 : i32
    return %arg0, %c0_i32, %c0_i32_0 : i32, i32, i32
  }
}

</mosaic_0001>

<bundles_post_ra>
// kernel: tpu_custom_call.1
= control target key start
LH: loop header
LB: loop body
LE: loop exit
PB: predicated region body
PF: predicated region fallthrough
CT: control target
= control target key end

     0   :  { %8 = vsyncpa [#allocation5], 0  ;;  %s967_s0 = inlined_call_operand.hbm [shape: f32[2,32,256], index: 0, kind: input, shape index: {}]   ;;  %s968_s1 = inlined_call_operand.vmem [shape: f32[2,32], index: 1, kind: input, shape index: {}]   ;;  %s969_s2 = inlined_call_operand.vmem [shape: f32[32,2], index: 2, kind: input, shape index: {}]   ;;  %s970_s3 = inlined_call_operand.vmem [shape: f32[2,32,1], index: 3, kind: output, shape index: {}]  }
   0x1   :  { %10 = vsyncpa [#allocation5 + $0x1], 0  ;;  %s815_s12 = smov 0   ;;  %s817_s13 = smov 0  }
   0x2   :  { %s819_s14 = smov 0   ;;  %s821_s15 = smov 0  }
   0x3   :  { %s823_s16 = smov 0   ;;  %s825_s17 = smov 0  }
   0x4   :  { %s827_s18 = smov 0   ;;  %s829_s19 = smov 0  }
   0x5 LB: > { %s558_s20 = sadd.s32 4294967295, %s786_s19   ;;  %s25_s21 = sadd.s32 1, %s778_s17  ;;  %s786_s19 = sphi %s829_s19, %s16_s19   ;;  %s782_s18 = sphi %s827_s18, %s979_s18   ;;  %s778_s17 = sphi %s825_s17, %s978_s17   ;;  %s774_s16 = sphi %s823_s16, %s977_s16   ;;  %s770_s15 = sphi %s821_s15, %s976_s15   ;;  %s766_s14 = sphi %s819_s14, %s975_s14   ;;  %s762_s13 = sphi %s817_s13, %s974_s13   ;;  %s758_s12 = sphi %s815_s12, %s973_s12  }
   0x6   : > { %p26_p0 = scmp.ge.s32.totalorder %s25_s21, 2  ;;  %s28_s22 = sadd.s32 1, %s782_s18 }
   0x7   : > { %s37_s23 = sadd.s32 1, %s766_s14  ;;  %p44_p1 = scmp.ne.s32.totalorder %s766_s14, %s762_s13 }
   0x8   : > { %s981_s21 = smov (%p26_p0, %s25_s21), 0  ;;  %s983_s22 = smov (!%p26_p0, %s28_s22), %s782_s18 }
   0x9   : > { %s33_s24 = ssub.s32 %s778_s17, %s981_s21  ;;  %p45_p2 = scmp.eq.s32.totalorder %s786_s19, 0 }
   0xa   : > { %p30_p3 = scmp.ge.s32.totalorder %s983_s22, 2  ;;  %p50_p4 = scmp.ne.s32.totalorder %s762_s13, %s758_s12 }
   0xb   : > { %p866_p5 = por %p45_p2, %p44_p1  ;;  %p51_p6 = scmp.eq.s32.totalorder %s558_s20, 0 }
   0xc   : > { %s985_s22 = smov (%p30_p3, %s983_s22), 0  ;;  %p592_p8 = scmp.lt.s32.totalorder %s786_s19, 4 }
   0xd   : > { %p872_p7 = por %p51_p6, %p50_p4  ;;  %s32_s27 = ssub.s32 %s782_s18, %s985_s22 }
   0xe   : > { %s34_s28 = sor.u32 %s33_s24, %s32_s27  ;;  %s148_s29 = sand.u32 1, %s766_s14  }
   0xf   : > { %p35_p9 = scmp.eq.s32.totalorder %s34_s28, 0  ;;  %s562_s30 = sshll.u32 %s148_s29, 5 }
  0x10   : > { %s563_s4 = sshll.u32 %s782_s18, 3  ;;  %s152_s8 = scalar_lea.vmem [#allocation4], %s562_s30 }
  0x11   : > { %s882_s5 = scalar_select %p35_p9, %s766_s14, %s37_s23  }
  0x12   : > { %s156_s6 = sadd.s32 %s778_s17, %s563_s4  ;;  %s161_s9 = sshll.u32 %s152_s8, 4  ;;  %s162_s9 = int_to_ptr.vmem [resolvable:$true] %s161_s9 }
  0x13   : > { %s564_s7 = sshll.u32 %s156_s6, 3  ;;  %p589_p10 = pnand %p592_p8, %p866_p5 }
  0x14   : > { %s158_s12 = scalar_lea.hbm %s967_s0, %s564_s7  ;;  %p565_p11 = scmp.ge.s32.totalorder %s786_s19, 1 }
  0x15   : > { %s159_s20 = sshll.u32 %s158_s12, 4  ;;  %s149_s24 = scalar_lea.sflag [#allocation5], %s148_s29  ;;  %s160_s20 = int_to_ptr.hbm [resolvable:$true] %s159_s20 }
  0x16   : > { %s788_s27 = smov 256   ;;  %s789_s23 = smov 128  }
  0x17   : > { %s790_s28 = smov 8   ;;  %p169_p12 = scmp.lt.s32.totalorder %s786_s19, 5 }
  0x18   : > { %591 = dma.hbm_to_vmem [thread:$0]  (!%p589_p10), %s160_s20, 512, %s162_s9, %s149_s24, %s788_s27, %s789_s23, %s790_s28  }
  0x19   : > { %p170_p13 = pnand %p565_p11, %p169_p12 }
  0x1a   : > { %s175_s30 = sand.u32 (!%p170_p13), 1, %s762_s13  }
  0x1b   : > { %173 = sbr.rel (%p170_p13) target bundleno = 734 (0x2de), region = 32  ;;  %s566_s4 = sshll.u32 (!%p170_p13), %s175_s30, 5 }
  0x1c   : > { %s176_s6 = scalar_lea.sflag (!%p170_p13), [#allocation5], %s175_s30  ;;  %s179_s7 = scalar_lea.vmem (!%p170_p13), [#allocation4], %s566_s4 }
  0x20   : > { %753 = dma.done.wait (%p872_p7), %s176_s6, 512  }
  0x21   : > { %755 = vsyncadd (%p872_p7), %s176_s6, 4294966784  ;;  %p203_p0 = scmp.lt.s32.totalorder %s774_s16, 1  ;;  %p569_p1 = scmp.ne.s32.totalorder %s770_s15, 0 }
  0x23   : > { %s987_s16 = smov (!%p203_p0, %s774_s16), 1  ;;  %211 = sbr.rel (%p569_p1) target bundleno = 49 (0x31), region = 40 }
  0x24   : > { %s583_s25 = sshll.u32 %s987_s16, 5 }
  0x25   : > { %s904_s9 = scalar_lea.vmem %s970_s3, %s583_s25 }
  0x28   : > { %vm212_vm0 = vcmask 7168   ;;  %v791_v0 = vmov 0.0   ;;  %v792_v1 = vmov -inf  }
  0x29   : > { %213 = vst.msk [vmem:[#allocation2] sm:$0xff] %vm212_vm0, %v791_v0 }
  0x2a   : > { %214 = vst.msk [vmem:[#allocation2 + $0x8] sm:$0xff] %vm212_vm0, %v791_v0 }
  0x2b   : > { %215 = vst.msk [vmem:[#allocation2 + $0x10] sm:$0xff] %vm212_vm0, %v791_v0 }
  0x2c   : > { %216 = vst.msk [vmem:[#allocation2 + $0x18] sm:$0xff] %vm212_vm0, %v791_v0 }
  0x2d   : > { %217 = vst.msk [vmem:[#allocation3] sm:$0xff] %vm212_vm0, %v792_v1 }
  0x2e   : > { %218 = vst.msk [vmem:[#allocation3 + $0x8] sm:$0xff] %vm212_vm0, %v792_v1 }
  0x2f   : > { %219 = vst.msk [vmem:[#allocation3 + $0x10] sm:$0xff] %vm212_vm0, %v792_v1 }
  0x30   : > { %220 = vst.msk [vmem:[#allocation3 + $0x18] sm:$0xff] %vm212_vm0, %v792_v1 }
  0x31 PF: > { %v223_v2 = vld [vmem:[%s179_s7 + $0x10] sm:$0xff]  ;;  %v221_v3 = vld [vmem:[%s179_s7] sm:$0xff]  ;;  %v224_v4 = vld [vmem:[%s179_s7 + $0x18] sm:$0xff]  ;;  %vm241_vm1 = vcmask 7168   ;;  %p570_p2 = scmp.ne.s32.totalorder %s770_s15, 1 }
  0x32   : > { %233 = vadd.xlane.f32.xlu1 %v223_v2  ;;  %229 = vadd.xlane.f32.xlu0 %v221_v3  ;;  %v222_v5 = vld [vmem:[%s179_s7 + $0x8] sm:$0xff]  ;;  %v227_v6 = vld [vmem:[#allocation2 + $0x10] sm:$0xff]  ;;  %v225_v7 = vld [vmem:[#allocation2] sm:$0xff]  ;;  %s793_s16 = smov (!%p570_p2), 1   ;;  %s794_s30 = smov (!%p570_p2), 127  }
  0x33   : > { %250 = vmax.xlane.f32.xlu2 %v221_v3  ;;  %v228_v15 = vld [vmem:[#allocation2 + $0x18] sm:$0xff]  ;;  %v226_v16 = vld [vmem:[#allocation2 + $0x8] sm:$0xff] }
  0x34   : > { %v246_v8 = vld [vmem:[#allocation3] sm:$0xff] }
  0x35   : > { %v247_v17 = vld [vmem:[#allocation3 + $0x8] sm:$0xff] }
  0x36   : > { %v248_v25 = vld [vmem:[#allocation3 + $0x10] sm:$0xff] }
  0x37   : > { %v249_v24 = vld [vmem:[#allocation3 + $0x18] sm:$0xff] }
  0x3a   : > { %235 = vadd.xlane.f32.xlu1 %v224_v4  ;;  %231 = vadd.xlane.f32.xlu0 %v222_v5 }
  0x3b   : > { %252 = vmax.xlane.f32.xlu2 %v222_v5 }
  0x42   : > { %256 = vmax.xlane.f32.xlu1 %v224_v4  ;;  %254 = vmax.xlane.f32.xlu0 %v223_v2 }
  0xa5   : > { %v234_v9 = vpop.xlane.xlu1 %233  ;;  %v230_v10 = vpop.xlane.xlu0 %229 }
  0xa6   : > { %v239_v11 = vadd.f32 %v234_v9, %v227_v6  ;;  %v237_v12 = vadd.f32 %v230_v10, %v225_v7  ;;  %v251_v13 = vpop.xlane.xlu2 %250 }
  0xa7   : > { %v258_v14 = vmax.f32 %v246_v8, %v251_v13 }
  0xa8   : > { %244 = vst.msk [vmem:[#allocation2 + $0x10] sm:$0xff] %vm241_vm1, %v239_v11 }
  0xa9   : > { %242 = vst.msk [vmem:[#allocation2] sm:$0xff] %vm241_vm1, %v237_v12 }
  0xaa   : > { %262 = vst.msk [vmem:[#allocation3] sm:$0xff] %vm241_vm1, %v258_v14 }
  0xad   : > { %v236_v18 = vpop.xlane.xlu1 %235  ;;  %v232_v19 = vpop.xlane.xlu0 %231 }
  0xae   : > { %v240_v20 = vadd.f32 %v236_v18, %v228_v15  ;;  %v238_v21 = vadd.f32 %v232_v19, %v226_v16  ;;  %v253_v22 = vpop.xlane.xlu2 %252 }
  0xaf   : > { %v259_v23 = vmax.f32 %v247_v17, %v253_v22 }
  0xb0   : > { %245 = vst.msk [vmem:[#allocation2 + $0x18] sm:$0xff] %vm241_vm1, %v240_v20 }
  0xb1   : > { %243 = vst.msk [vmem:[#allocation2 + $0x8] sm:$0xff] %vm241_vm1, %v238_v21 }
  0xb2   : > { %263 = vst.msk [vmem:[#allocation3 + $0x8] sm:$0xff] %vm241_vm1, %v259_v23 }
  0xb5   : > { %v257_v26 = vpop.xlane.xlu1 %256  ;;  %v255_v27 = vpop.xlane.xlu0 %254  ;;  %269 = sbr.rel (%p570_p2) target bundleno = 734 (0x2de), region = 44 }
  0xb6   : > { %v261_v28 = vmax.f32 %v249_v24, %v257_v26  ;;  %v260_v29 = vmax.f32 %v248_v25, %v255_v27 }
  0xb8   : > { %265 = vst.msk [vmem:[#allocation3 + $0x18] sm:$0xff] %vm241_vm1, %v261_v28 }
  0xb9   : > { %264 = vst.msk [vmem:[#allocation3 + $0x10] sm:$0xff] %vm241_vm1, %v260_v29 }
  0xba   : > { %v278_v33 = vld [vmem:[#allocation3] sm:$0xff]  ;;  %v279_v34 = vld [vmem:[#allocation3 + $0x8] sm:$0xff]  ;;  %v273_v36 = vld [vmem:[#allocation2 + $0x18] sm:$0xff]  ;;  %vm307_vm2 = vcmask 261120   ;;  %vm345_vm3 = vcmask 1041408   ;;  %vm332_vm4 = vcmask 15360  }
  0xbb   : > { %v669_v35 = vpack.i.bf16 %v278_v33, %v279_v34  ;;  %v272_v37 = vld [vmem:[#allocation2 + $0x10] sm:$0xff]  ;;  %v277_v38 = vmul.f32 0.00390625, %v273_v36  ;;  %v271_v44 = vld [vmem:[#allocation2 + $0x8] sm:$0xff]  ;;  %v270_v46 = vld [vmem:[#allocation2] sm:$0xff] }
  0xbc   : > { %v276_v42 = vmul.f32 0.00390625, %v272_v37  ;;  %v275_v47 = vmul.f32 0.00390625, %v271_v44  ;;  %v274_v51 = vmul.f32 0.00390625, %v270_v46  ;;  %v302_v53 = vld [vmem:[%s968_s1] sm:$0x3]  ;;  %v304_v58 = vld [vmem:[%s969_s2 + $0x8] sm:$0xff] }
  0xbd   : > { %v303_v57 = vld [vmem:[%s969_s2] sm:$0xff]  ;;  %v306_v59 = vld [vmem:[%s969_s2 + $0x18] sm:$0xff]  ;;  %v305_v60 = vld [vmem:[%s969_s2 + $0x10] sm:$0xff] }
  0xbf   : > { %v281_v31 = vld [vmem:[#allocation3 + $0x18] sm:$0xff] }
  0xc0   : > { %v280_v30 = vld [vmem:[#allocation3 + $0x10] sm:$0xff] }
  0xc1   : > { %v664_v32 = vpack.i.bf16 %v280_v30, %v281_v31 }
  0xc3   : > { %665 = vrot.lane.b32.xlu0 %v664_v32, %s793_s16 }
  0xcb   : > { %670 = vrot.lane.b32.xlu0 %v669_v35, %s793_s16 }
 0x135   : > { %v666_v39 = vpop.permute.xlu0 %665 }
 0x136   : > { %v668_v40 = vunpack.i.h.bf16 %v666_v39  ;;  %v667_v41 = vunpack.i.l.bf16 %v666_v39 }
 0x138   : > { %v301_v43 = vsel %vm241_vm1, %v277_v38, %v667_v41  ;;  %v300_v45 = vsel %vm241_vm1, %v276_v42, %v668_v40 }
 0x139   : > { %323 = vmatpush.msra.mxu0 %v301_v43 }
 0x13b   : > { %324 = vmatpush.msra.mxu0 %v300_v45 }
 0x13d   : > { %v671_v48 = vpop.permute.xlu0 %670 }
 0x13e   : > { %v673_v49 = vunpack.i.h.bf16 %v671_v48  ;;  %v672_v50 = vunpack.i.l.bf16 %v671_v48 }
 0x140   : > { %v299_v52 = vsel %vm241_vm1, %v275_v47, %v672_v50  ;;  %v298_v54 = vsel %vm241_vm1, %v274_v51, %v673_v49 }
 0x141   : > { %325 = vmatpush.msra.mxu0 %v299_v52 }
 0x143   : > { %326 = vmatpush.msra.mxu0 %v298_v54 }
 0x144   : > { %571 = vmatmul.msk.f32.vlgmr.msra.gmra.mxu0 %vm307_vm2, %v302_v53 }
 0x1c1   : > { %v328_v55 = vpop.f32.mrf.mxu0 }
 0x1c2   : > { %v331_v56 = vmax.f32 %v328_v55, 0.0 }
 0x1c4   : > { %572 = vmatpush.msk.msra.mxu1 %vm345_vm3, %v331_v56  ;;  %584 = vmatpush.msk.msra.mxu2 %vm345_vm3, %v331_v56 }
 0x1c5   : > { %585 = vmatpush.msk.msra.mxu3 %vm345_vm3, %v331_v56  ;;  %573 = vmatmul.msk.f32.vlgmr.msra.gmra.mxu1 %vm332_vm4, %v303_v57 }
 0x1c6   : > { %574 = vmatmul.msk.f32.vlgmr.msra.gmra.mxu2 %vm332_vm4, %v304_v58  ;;  %576 = vmatmul.msk.f32.vlgmr.msra.gmra.mxu3 %vm332_vm4, %v306_v59 }
 0x1ce   : > { %575 = vmatmul.msk.f32.gmra.mxu2 %vm332_vm4, %v305_v60 }
 0x242   : > { %v366_v61 = vpop.f32.mrf.mxu1 }
 0x243   : > { %382 = vrot.lane.b32.xlu1 %v366_v61, %s794_s30 }
 0x249   : > { %v369_v62 = vpop.f32.mrf.mxu2  ;;  %v375_v0 = vpop.f32.mrf.mxu3 }
 0x24b   : > { %384 = vrot.lane.b32.xlu1 %v369_v62, %s794_s30 }
 0x251   : > { %v372_v63 = vpop.f32.mrf.mxu2 }
 0x252   : > { %386 = vrot.lane.b32.xlu2 %v372_v63, %s794_s30 }
 0x25a   : > { %388 = vrot.lane.b32.xlu2 %v375_v0, %s794_s30 }
 0x2ac   : > { %v387_v1 = vpop.permute.xlu2 %386 }
 0x2ad   : > { %v396_v2 = vadd.f32 %v387_v1, %v372_v63 }
 0x2af   : > { %v579_v3 = vmul.f32 -1.442695, %v396_v2 }
 0x2b1   : > { %674 = vpow2.f32 %v579_v3 }
 0x2b4   : > { %v389_v4 = vpop.permute.xlu2 %388 }
 0x2b5   : > { %v397_v5 = vadd.f32 %v389_v4, %v375_v0  ;;  %v383_v6 = vpop.permute.xlu1 %382 }
 0x2b6   : > { %v394_v7 = vadd.f32 %v383_v6, %v366_v61 }
 0x2b7   : > { %v675_v8 = vpop.eup %674  ;;  %v580_v9 = vmul.f32 -1.442695, %v397_v5 }
 0x2b8   : > { %v412_v10 = vadd.f32 1.0, %v675_v8  ;;  %v577_v11 = vmul.f32 -1.442695, %v394_v7 }
 0x2b9   : > { %676 = vpow2.f32 %v580_v9 }
 0x2ba   : > { %678 = vrcp.f32 %v412_v10  ;;  %v455_v22 = vand.u32 2147483648, %v412_v10  ;;  %v453_v24 = vand.u32 2147483647, %v412_v10  ;;  %vm449_vm6 = vweird.f32 %v412_v10 }
 0x2bb   : > { %680 = vpow2.f32 %v577_v11 }
 0x2bc   : > { %v456_v27 = vor.u32 1.1754944e-38, %v455_v22  ;;  %vm454_vm8 = vcmp.eq.f32.partialorder %v453_v24, 8.507059e+37 }
 0x2bd   : > { %v385_v12 = vpop.permute.xlu1 %384 }
 0x2be   : > { %v395_v13 = vadd.f32 %v385_v12, %v369_v62 }
 0x2bf   : > { %v677_v14 = vpop.eup %676 }
 0x2c0   : > { %v679_v15 = vpop.eup %678  ;;  %v413_v16 = vadd.f32 1.0, %v677_v14  ;;  %v578_v17 = vmul.f32 -1.442695, %v395_v13 }
 0x2c1   : > { %v681_v18 = vpop.eup %680  ;;  %v445_v19 = vmul.f32 %v679_v15, %v412_v10  ;;  %vm450_vm5 = vweird.f32 %v679_v15 }
 0x2c2   : > { %682 = vrcp.f32 %v413_v16  ;;  %v410_v21 = vadd.f32 1.0, %v681_v18  ;;  %vm451_vm7 = vmor %vm449_vm6, %vm450_vm5  ;;  %v470_v35 = vand.u32 2147483648, %v413_v16  ;;  %v468_v38 = vand.u32 2147483647, %v413_v16 }
 0x2c3   : > { %v446_v20 = vsub.f32 1.0, %v445_v19  ;;  %684 = vpow2.f32 %v578_v17  ;;  %vm464_vm10 = vweird.f32 %v413_v16 }
 0x2c4   : > { %686 = vrcp.f32 %v410_v21  ;;  %v425_v41 = vand.u32 2147483648, %v410_v21  ;;  %v471_v42 = vor.u32 1.1754944e-38, %v470_v35  ;;  %v423_v44 = vand.u32 2147483647, %v410_v21 }
 0x2c5   : > { %v447_v23 = vmul.f32 %v679_v15, %v446_v20  ;;  %vm469_vm13 = vcmp.eq.f32.partialorder %v468_v38, 8.507059e+37  ;;  %vm419_vm14 = vweird.f32 %v410_v21 }
 0x2c6   : > { %v426_v49 = vor.u32 1.1754944e-38, %v425_v41  ;;  %vm424_vm0 = vcmp.eq.f32.partialorder %v423_v44, 8.507059e+37 }
 0x2c7   : > { %v448_v25 = vadd.f32 %v679_v15, %v447_v23 }
 0x2c8   : > { %v683_v26 = vpop.eup %682 }
 0x2c9   : > { %v685_v28 = vpop.eup %684  ;;  %v452_v29 = vsel %vm451_vm7, %v679_v15, %v448_v25  ;;  %v460_v30 = vmul.f32 %v683_v26, %v413_v16  ;;  %vm465_vm9 = vweird.f32 %v683_v26 }
 0x2ca   : > { %v457_v31 = vsel %vm454_vm8, %v456_v27, %v452_v29  ;;  %v411_v32 = vadd.f32 1.0, %v685_v28  ;;  %v687_v33 = vpop.eup %686  ;;  %vm466_vm11 = vmor %vm464_vm10, %vm465_vm9 }
 0x2cb   : > { %476 = vst.msk [vmem:[%s904_s9 + $0x10] sm:$0xff] %vm241_vm1, %v457_v31  ;;  %v461_v34 = vsub.f32 1.0, %v460_v30  ;;  %v415_v36 = vmul.f32 %v687_v33, %v410_v21  ;;  %vm420_vm12 = vweird.f32 %v687_v33 }
 0x2cc   : > { %688 = vrcp.f32 %v411_v32  ;;  %vm421_vm15 = vmor %vm419_vm14, %vm420_vm12  ;;  %v440_v54 = vand.u32 2147483648, %v411_v32  ;;  %v438_v56 = vand.u32 2147483647, %v411_v32  ;;  %vm434_vm3 = vweird.f32 %v411_v32 }
 0x2cd   : > { %v462_v37 = vmul.f32 %v683_v26, %v461_v34  ;;  %v416_v39 = vsub.f32 1.0, %v415_v36 }
 0x2ce   : > { %v441_v58 = vor.u32 1.1754944e-38, %v440_v54  ;;  %vm439_vm5 = vcmp.eq.f32.partialorder %v438_v56, 8.507059e+37 }
 0x2cf   : > { %v463_v40 = vadd.f32 %v683_v26, %v462_v37  ;;  %v417_v43 = vmul.f32 %v687_v33, %v416_v39 }
 0x2d1   : > { %v467_v45 = vsel %vm466_vm11, %v683_v26, %v463_v40  ;;  %v418_v48 = vadd.f32 %v687_v33, %v417_v43 }
 0x2d2   : > { %v689_v46 = vpop.eup %688  ;;  %v472_v47 = vsel %vm469_vm13, %v471_v42, %v467_v45 }
 0x2d3   : > { %477 = vst.msk [vmem:[%s904_s9 + $0x18] sm:$0xff] %vm241_vm1, %v472_v47  ;;  %v430_v50 = vmul.f32 %v689_v46, %v411_v32  ;;  %v422_v51 = vsel %vm421_vm15, %v687_v33, %v418_v48  ;;  %vm435_vm2 = vweird.f32 %v689_v46 }
 0x2d4   : > { %v427_v52 = vsel %vm424_vm0, %v426_v49, %v422_v51  ;;  %vm436_vm4 = vmor %vm434_vm3, %vm435_vm2 }
 0x2d5   : > { %v431_v53 = vsub.f32 1.0, %v430_v50  ;;  %474 = vst.msk [vmem:[%s904_s9] sm:$0xff] %vm241_vm1, %v427_v52 }
 0x2d7   : > { %v432_v55 = vmul.f32 %v689_v46, %v431_v53 }
 0x2d9   : > { %v433_v57 = vadd.f32 %v689_v46, %v432_v55 }
 0x2db   : > { %v437_v59 = vsel %vm436_vm4, %v689_v46, %v433_v57 }
 0x2dc   : > { %v442_v60 = vsel %vm439_vm5, %v441_v58, %v437_v59 }
 0x2dd   : > { %475 = vst.msk [vmem:[%s904_s9 + $0x8] sm:$0xff] %vm241_vm1, %v442_v60 }
 0x2de PF: > { %s16_s19 = sadd.s32 1, %s786_s19   ;;  %s973_s12 = smov %s762_s13 }
 0x2df   : > { %p13_p3 = scmp.ge.s32.totalorder %s16_s19, 6   ;;  %s974_s13 = smov %s766_s14 }
 0x2e0   : > { %s975_s14 = smov %s882_s5  ;;  %s976_s15 = smov %s778_s17 }
 0x2e1   : > { %s977_s16 = smov %s782_s18  ;;  %s978_s17 = smov %s981_s21 }
 0x2e2   : > { %s979_s18 = smov %s985_s22  ;;  %15 = sbr.rel (!%p13_p3) target bundleno = 5 (0x5), region = 80 }
 0x2e7   :  { %499 = vsyncpa [#allocation5], 1 }
 0x2e8   :  { %501 = vsyncpa [#allocation5 + $0x1], 1 }

</bundles_post_ra>
